<compile_context>
chip_gen: v7x
topology: tpu7x:2x2x1
jax: 0.10.0
libtpu: 0.0.40
codegen_flags: <defaults>
</compile_context>

<pallas_src>
import math

import jax
import jax.numpy as jnp
from jax.experimental import pallas as pl
from jax.experimental.pallas import tpu as pltpu

GAMMA = -0.1
ZETA = 1.1
REL_THRESHOLD = 3.0          # ClickSampler.relevance_threshold
_DEFAULT_TILE_ELEMS = 512 * 1024   # ~2 MiB of f32 per (double-buffered) tile

# pl.reciprocal routes the divide to the (otherwise idle) EUP slot on real TPUs;
# fall back to a plain divide when the kernel is interpreted on a non-TPU backend.
_ON_TPU = jax.default_backend() == "tpu"


def _fast_reciprocal(x):
    if _ON_TPU:
        return pl.reciprocal(x, approx=True)
    return 1.0 / x


# ---------------------------------------------------------------------------
# Kernel
# ---------------------------------------------------------------------------
def generator1_kernel(rel_ref, u_ref, ub_ref, kappa_ref, obs_ref, click_ref):
    u = u_ref[...]                         # (TILE_ROWS, W) noise in [0, 1)
    kappa = kappa_ref[...]                 # (1, W) = exp(-c), broadcasts over rows

    # s = sigmoid(log u - log(1-u) + c)  ==  u / (u + kappa*(1-u)),  kappa = exp(-c)
    denom = u + kappa * (1.0 - u)
    s = u * _fast_reciprocal(denom)
    mean_s = s * (ZETA - GAMMA) + GAMMA
    z = jnp.minimum(1.0, jnp.maximum(0.0, mean_s))       # observation_scores
    obs_ref[...] = z

    # ClickSampler: p = 1.0, except 0.1 where relevance < threshold.
    # Since ub in [0,1), the p == 1.0 branch always clicks:
    #   click = (rel >= 3) | (ub < 0.1)
    click = jnp.logical_or(rel_ref[...] >= REL_THRESHOLD, ub_ref[...] < 0.1)
    click_ref[...] = jnp.where(click, z, 0.0)            # fake_click_logs


# ---------------------------------------------------------------------------
# Tiling helpers
# ---------------------------------------------------------------------------
def _choose_fold(batch, rank, max_width=1024):
    """Largest k with batch % k == 0, (k*rank) % 128 == 0 and k*rank <= max_width."""
    k_min = 128 // math.gcd(rank, 128)
    best = 1
    k = k_min
    while k <= batch and k * rank <= max_width:
        if batch % k == 0:
            best = k
        k += k_min
    return best


def _choose_tile_rows(rows, width, max_tile_elems):
    """Largest row tile that divides `rows`, keeps the tile <= max_tile_elems
    elements, and obeys the TPU block rule (multiple of 8 rows or full extent)."""
    target = max(1, max_tile_elems // width)
    if rows <= target:
        return rows
    t = (target // 8) * 8
    while t >= 8:
        if rows % t == 0:
            return t
        t -= 8
    return rows   # no valid divisor found -> single block over all rows


# ---------------------------------------------------------------------------
# Wrappers
# ---------------------------------------------------------------------------
def generator1_apply(relevance_scores, alpha, beta, u, ub,
                     *, max_tile_elems=_DEFAULT_TILE_ELEMS):
    """Fused BinaryApproximator + ClickSampler given explicit random draws."""
    B, R = relevance_scores.shape
    assert alpha.shape == (1, R) and beta.shape == (1, R)
    assert u.shape == (B, R) and ub.shape == (B, R)

    # All transcendentals amortised over the (1, R) parameter vector.
    sp_a = jax.nn.softplus(alpha.astype(jnp.float32))
    sp_b = jax.nn.softplus(beta.astype(jnp.float32))
    kappa = jnp.exp(-jnp.log(sp_a) / sp_b)                # (1, R)

    # Lane-dense fold: free contiguous reshape (B, R) -> (B/k, k*R).
    fold = _choose_fold(B, R)
    rows, width = B // fold, fold * R
    rel_f = relevance_scores.reshape(rows, width)
    u_f = u.reshape(rows, width)
    ub_f = ub.reshape(rows, width)
    kappa_f = jnp.tile(kappa, (1, fold))                  # (1, k*R)

    tile_rows = _choose_tile_rows(rows, width, max_tile_elems)
    grid = (rows // tile_rows,)
    row_spec = pl.BlockSpec((tile_rows, width), lambda i: (i, 0))

    obs_f, click_f = pl.pallas_call(
        generator1_kernel,
        out_shape=(jax.ShapeDtypeStruct((rows, width), jnp.float32),
                   jax.ShapeDtypeStruct((rows, width), jnp.float32)),
        grid=grid,
        in_specs=[row_spec,                                  # relevance
                  row_spec,                                  # u  (noise)
                  row_spec,                                  # ub (bernoulli draw)
                  pl.BlockSpec((1, width), lambda i: (0, 0))],  # kappa (broadcast)
        out_specs=(row_spec, row_spec),
        compiler_params=pltpu.CompilerParams(
            dimension_semantics=("parallel",),   # v7x: shard batch tiles over 2 TCs
            vmem_limit_bytes=48 * 1024 * 1024,   # v5e default (16 MiB) is too small
        ),
    )(rel_f, u_f, ub_f, kappa_f)

    return obs_f.reshape(B, R), click_f.reshape(B, R)


def generator1_forward(relevance_scores, alpha, beta, key):
    """Mirrors Generator1.forward: draws the noise + click uniforms, runs the kernel."""
    B, R = relevance_scores.shape
    k_u, k_b = jax.random.split(key)
    u = jax.random.uniform(k_u, (B, R), dtype=jnp.float32)    # torch.rand noise
    ub = jax.random.uniform(k_b, (B, R), dtype=jnp.float32)   # torch.bernoulli draw
    return generator1_apply(relevance_scores, alpha, beta, u, ub)


def generator1_reference(relevance_scores, alpha, beta, u, ub):
    """Pure-jnp reference using the original (log/sigmoid) formulation."""
    sp_a = jax.nn.softplus(alpha.astype(jnp.float32))
    sp_b = jax.nn.softplus(beta.astype(jnp.float32))
    logits = jnp.log(u) - jnp.log(1.0 - u) + jnp.log(sp_a) / sp_b
    s = jax.nn.sigmoid(logits)
    mean_s = s * (ZETA - GAMMA) + GAMMA
    z = jnp.minimum(1.0, jnp.maximum(0.0, mean_s))
    p = jnp.where(relevance_scores < REL_THRESHOLD, 0.1, 1.0)
    clicks = (ub < p).astype(jnp.float32)
    return z, clicks * z


# ---------------------------------------------------------------------------
if __name__ == "__main__":
    key = jax.random.PRNGKey(0)
    (k_rel, k_a, k_b, k_u, k_ub,
     k_rel_s, k_u_s, k_ub_s, k_fwd) = jax.random.split(key, 9)

    # batch=1024, rank_cut=16 (Generator1 uses rank_size == rank_cut)
    B, R = 1024, 16
    relevance = jax.random.randint(k_rel, (B, R), 0, 5).astype(jnp.float32)
    alpha = jax.random.normal(k_a, (1, R), dtype=jnp.float32)     # nn.Parameter(randn)
    beta = jax.random.uniform(k_b, (1, R), dtype=jnp.float32)     # nn.Parameter(rand)
    u = jax.random.uniform(k_u, (B, R), dtype=jnp.float32)
    ub = jax.random.uniform(k_ub, (B, R), dtype=jnp.float32)

    # Main path (lane-dense fold, single-step grid at this size).
    obs, clicks = generator1_apply(relevance, alpha, beta, u, ub)
    jax.block_until_ready((obs, clicks))
    obs_ref, clicks_ref = generator1_reference(relevance, alpha, beta, u, ub)

    assert obs.shape == (B, R) and clicks.shape == (B, R)
    assert bool(jnp.all((obs >= 0.0) & (obs <= 1.0)))
    assert bool(jnp.allclose(obs, obs_ref, atol=5e-3, rtol=5e-3))
    assert bool(jnp.allclose(clicks, clicks_ref, atol=5e-3, rtol=5e-3))

    # Multi-tile grid path (small tile cap forces grid=(2,) over folded rows).
    obs2, clicks2 = generator1_apply(relevance, alpha, beta, u, ub,
                                     max_tile_elems=8 * 1024)
    assert bool(jnp.allclose(obs2, obs_ref, atol=5e-3, rtol=5e-3))
    assert bool(jnp.allclose(clicks2, clicks_ref, atol=5e-3, rtol=5e-3))

    # Tiny no-fold fallback path (B=2, R=8 -> whole-array single block).
    Bs, Rs = 2, 8
    rel_s = jax.random.randint(k_rel_s, (Bs, Rs), 0, 5).astype(jnp.float32)
    u_s = jax.random.uniform(k_u_s, (Bs, Rs), dtype=jnp.float32)
    ub_s = jax.random.uniform(k_ub_s, (Bs, Rs), dtype=jnp.float32)
    a_s, b_s = alpha[:, :Rs], beta[:, :Rs]
    obs_s, clicks_s = generator1_apply(rel_s, a_s, b_s, u_s, ub_s)
    obs_s_ref, clicks_s_ref = generator1_reference(rel_s, a_s, b_s, u_s, ub_s)
    assert bool(jnp.allclose(obs_s, obs_s_ref, atol=5e-3, rtol=5e-3))
    assert bool(jnp.allclose(clicks_s, clicks_s_ref, atol=5e-3, rtol=5e-3))

    # Module-style forward (draws its own randomness).
    obs_fwd, clicks_fwd = generator1_forward(relevance, alpha, beta, k_fwd)
    jax.block_until_ready((obs_fwd, clicks_fwd))
    assert obs_fwd.shape == (B, R) and clicks_fwd.shape == (B, R)

    print("KERNEL_OK")
</pallas_src>

<mosaic_0001>
module attributes {stable_mosaic.version = 11 : i64} {
  func.func @generator1_kernel(%arg0: i32, %arg1: memref<16x1024xf32, #tpu.memory_space<vmem>>, %arg2: memref<16x1024xf32, #tpu.memory_space<vmem>>, %arg3: memref<16x1024xf32, #tpu.memory_space<vmem>>, %arg4: memref<1x1024xf32, #tpu.memory_space<vmem>>, %arg5: memref<16x1024xf32, #tpu.memory_space<vmem>>, %arg6: memref<16x1024xf32, #tpu.memory_space<vmem>>) attributes {dimension_semantics = [#tpu.dimension_semantics<parallel>], iteration_bounds = array<i64: 1>, scalar_prefetch = 0 : i64, scratch_operands = 0 : i64, tpu.core_type = #tpu.core_type<tc>, window_params = [{transform_indices = @transform_0, window_bounds = array<i64: 16, 1024>}, {transform_indices = @transform_1, window_bounds = array<i64: 16, 1024>}, {transform_indices = @transform_2, window_bounds = array<i64: 16, 1024>}, {pipeline_mode = #tpu.pipeline_mode<synchronous>, transform_indices = @transform_3, window_bounds = array<i64: 1, 1024>}, {transform_indices = @transform_4, window_bounds = array<i64: 16, 1024>}, {transform_indices = @transform_5, window_bounds = array<i64: 16, 1024>}]} {
    %c0 = arith.constant 0 : index
    %c0_0 = arith.constant 0 : index
    %0 = vector.load %arg2[%c0, %c0_0] : memref<16x1024xf32, #tpu.memory_space<vmem>>, vector<16x1024xf32>
    %c0_1 = arith.constant 0 : index
    %c0_2 = arith.constant 0 : index
    %1 = vector.load %arg4[%c0_1, %c0_2] : memref<1x1024xf32, #tpu.memory_space<vmem>>, vector<1x1024xf32>
    %cst = arith.constant 1.000000e+00 : f32
    %2 = vector.broadcast %cst : f32 to vector<16x1024xf32>
    %3 = arith.subf %2, %0 : vector<16x1024xf32>
    %4 = vector.broadcast %1 : vector<1x1024xf32> to vector<16x1024xf32>
    %5 = arith.mulf %4, %3 : vector<16x1024xf32>
    %6 = arith.addf %0, %5 : vector<16x1024xf32>
    %cst_3 = arith.constant 1.000000e+00 : f32
    %7 = vector.broadcast %cst_3 : f32 to vector<16x1024xf32>
    %8 = arith.divf %7, %6 : vector<16x1024xf32>
    %9 = arith.mulf %0, %8 : vector<16x1024xf32>
    %cst_4 = arith.constant 1.200000e+00 : f32
    %10 = vector.broadcast %cst_4 : f32 to vector<16x1024xf32>
    %11 = arith.mulf %9, %10 : vector<16x1024xf32>
    %cst_5 = arith.constant -1.000000e-01 : f32
    %12 = vector.broadcast %cst_5 : f32 to vector<16x1024xf32>
    %13 = arith.addf %11, %12 : vector<16x1024xf32>
    %cst_6 = arith.constant 0.000000e+00 : f32
    %14 = vector.broadcast %cst_6 : f32 to vector<16x1024xf32>
    %15 = arith.maximumf %14, %13 : vector<16x1024xf32>
    %cst_7 = arith.constant 1.000000e+00 : f32
    %16 = vector.broadcast %cst_7 : f32 to vector<16x1024xf32>
    %17 = arith.minimumf %16, %15 : vector<16x1024xf32>
    %c0_8 = arith.constant 0 : index
    %c0_9 = arith.constant 0 : index
    %18 = vector.load %arg5[%c0_8, %c0_9] : memref<16x1024xf32, #tpu.memory_space<vmem>>, vector<16x1024xf32>
    tpu.vector_store %arg5[%c0_8, %c0_9], %17 {strides = array<i32>} : memref<16x1024xf32, #tpu.memory_space<vmem>>, vector<16x1024xf32>,
    %c0_10 = arith.constant 0 : index
    %c0_11 = arith.constant 0 : index
    %19 = vector.load %arg1[%c0_10, %c0_11] : memref<16x1024xf32, #tpu.memory_space<vmem>>, vector<16x1024xf32>
    %cst_12 = arith.constant 3.000000e+00 : f32
    %20 = vector.broadcast %cst_12 : f32 to vector<16x1024xf32>
    %21 = arith.cmpf oge, %19, %20 : vector<16x1024xf32>
    %c0_13 = arith.constant 0 : index
    %c0_14 = arith.constant 0 : index
    %22 = vector.load %arg3[%c0_13, %c0_14] : memref<16x1024xf32, #tpu.memory_space<vmem>>, vector<16x1024xf32>
    %cst_15 = arith.constant 1.000000e-01 : f32
    %23 = vector.broadcast %cst_15 : f32 to vector<16x1024xf32>
    %24 = arith.cmpf olt, %22, %23 : vector<16x1024xf32>
    %25 = arith.ori %21, %24 : vector<16x1024xi1>
    %cst_16 = arith.constant 0.000000e+00 : f32
    %26 = vector.broadcast %cst_16 : f32 to vector<16x1024xf32>
    %27 = arith.select %25, %17, %26 : vector<16x1024xi1>, vector<16x1024xf32>
    %c0_17 = arith.constant 0 : index
    %c0_18 = arith.constant 0 : index
    %28 = vector.load %arg6[%c0_17, %c0_18] : memref<16x1024xf32, #tpu.memory_space<vmem>>, vector<16x1024xf32>
    tpu.vector_store %arg6[%c0_17, %c0_18], %27 {strides = array<i32>} : memref<16x1024xf32, #tpu.memory_space<vmem>>, vector<16x1024xf32>,
    return
  }
  func.func @transform_0(%arg0: i32) -> (i32, i32) {
    %c0_i32 = arith.constant 0 : i32
    %c0_i32_0 = arith.constant 0 : i32
    return %arg0, %c0_i32 : i32, i32
  }
  func.func @transform_1(%arg0: i32) -> (i32, i32) {
    %c0_i32 = arith.constant 0 : i32
    %c0_i32_0 = arith.constant 0 : i32
    return %arg0, %c0_i32 : i32, i32
  }
  func.func @transform_2(%arg0: i32) -> (i32, i32) {
    %c0_i32 = arith.constant 0 : i32
    %c0_i32_0 = arith.constant 0 : i32
    return %arg0, %c0_i32 : i32, i32
  }
  func.func @transform_3(%arg0: i32) -> (i32, i32) {
    %c0_i32 = arith.constant 0 : i32
    %c0_i32_0 = arith.constant 0 : i32
    %c0_i32_1 = arith.constant 0 : i32
    return %c0_i32, %c0_i32_0 : i32, i32
  }
  func.func @transform_4(%arg0: i32) -> (i32, i32) {
    %c0_i32 = arith.constant 0 : i32
    %c0_i32_0 = arith.constant 0 : i32
    return %arg0, %c0_i32 : i32, i32
  }
  func.func @transform_5(%arg0: i32) -> (i32, i32) {
    %c0_i32 = arith.constant 0 : i32
    %c0_i32_0 = arith.constant 0 : i32
    return %arg0, %c0_i32 : i32, i32
  }
}

</mosaic_0001>

<bundles_post_ra>
// kernel: tpu_custom_call.1
= control target key start
LH: loop header
LB: loop body
LE: loop exit
PB: predicated region body
PF: predicated region fallthrough
CT: control target
= control target key end

     0   :  { %11 = vsyncpa [#allocation3], 0  ;;  %s976_s0 = inlined_call_operand.hbm [shape: f32[16,1024], index: 0, kind: input, shape index: {}]   ;;  %s977_s1 = inlined_call_operand.hbm [shape: f32[16,1024], index: 1, kind: input, shape index: {}]   ;;  %s978_s2 = inlined_call_operand.hbm [shape: f32[16,1024], index: 2, kind: input, shape index: {}]   ;;  %s979_s3 = inlined_call_operand.vmem [shape: f32[1,1024], index: 3, kind: input, shape index: {}]   ;;  %s980_s4 = inlined_call_operand.hbm [shape: f32[16,1024], index: 4, kind: output, shape index: {0}]   ;;  %s981_s5 = inlined_call_operand.hbm [shape: f32[16,1024], index: 5, kind: output, shape index: {1}]  }
   0x1   :  { %12 = vsyncpa [#allocation6], 0 }
   0x2   :  { %13 = vsyncpa [#allocation4], 0 }
   0x3   :  { %14 = vsyncpa [#allocation10], 0  ;;  %s599_s18 = smov [#allocation5]   ;;  %s600_s20 = smov [#allocation2]  }
   0x4   :  { %s32_s19 = sshll.u32 %s599_s18, 4  ;;  %s20_s21 = sshll.u32 %s600_s20, 4  ;;  %s33_s19 = int_to_ptr.vmem [resolvable:$true] %s32_s19  ;;  %s636_s21 = int_to_ptr.vmem [resolvable:$true] %s20_s21 }
   0x5   :  { %s481_s24 = scalar_lea.hbm %s977_s1, 2048 }
   0x6   :  { %p482_p0 = scmp.ne.s32.totalorder %s977_s1, %s481_s24  ;;  %p485_p1 = scmp.lt.u32.totalorder %s481_s24, %s977_s1 }
   0x8   :  { %p487_p2 = pnand %p485_p1, %p482_p0 }
   0xa   :  { %490 = shalt.err (!%p487_p2)
}
   0xb   :  { %s491_s29 = scalar_lea.vmem %s33_s19, 2048  ;;  %p496_p4 = scmp.lt.s32.totalorder %s33_s19, %s33_s19 }
   0xc   :  { %p492_p3 = scmp.ne.s32.totalorder %s33_s19, %s491_s29  ;;  %p497_p5 = scmp.lt.s32.totalorder %s491_s29, %s491_s29 }
   0xe   :  { %p498_p6 = por %p497_p5, %p496_p4 }
  0x10   :  { %p499_p7 = pnand %p498_p6, %p492_p3 }
  0x12   :  { %502 = shalt.err (!%p499_p7)
}
  0x13   :  { %s601_s30 = smov 1024   ;;  %s602_s6 = smov 64  }
  0x14   :  { %38 = dma.hbm_to_vmem [thread:$0]  %s977_s1, 2048, %s33_s19, [#allocation6], %s601_s30, %s601_s30, %s602_s6  }
  0x15   :  { %s503_s11 = scalar_lea.hbm %s976_s0, 2048 }
  0x16   :  { %p504_p8 = scmp.ne.s32.totalorder %s976_s0, %s503_s11  ;;  %p507_p9 = scmp.lt.u32.totalorder %s503_s11, %s976_s0 }
  0x18   :  { %p509_p10 = pnand %p507_p9, %p504_p8 }
  0x1a   :  { %512 = shalt.err (!%p509_p10)
}
  0x1b   :  { %s513_s16 = scalar_lea.vmem %s636_s21, 2048  ;;  %p518_p12 = scmp.lt.s32.totalorder %s636_s21, %s636_s21 }
  0x1c   :  { %p514_p11 = scmp.ne.s32.totalorder %s636_s21, %s513_s16  ;;  %p519_p13 = scmp.lt.s32.totalorder %s513_s16, %s513_s16 }
  0x1e   :  { %p520_p0 = por %p519_p13, %p518_p12 }
  0x20   :  { %p521_p1 = pnand %p520_p0, %p514_p11 }
  0x22   :  { %524 = shalt.err (!%p521_p1)
}
  0x23   :  { %26 = dma.hbm_to_vmem [thread:$0]  %s976_s0, 2048, %s636_s21, [#allocation3], %s601_s30, %s601_s30, %s602_s6  }
  0x24   :  { %s603_s18 = smov [#allocation7]   ;;  %s525_s23 = scalar_lea.hbm %s978_s2, 2048 }
  0x25   :  { %s44_s19 = sshll.u32 %s603_s18, 4  ;;  %p526_p2 = scmp.ne.s32.totalorder %s978_s2, %s525_s23  ;;  %s45_s19 = int_to_ptr.vmem [resolvable:$true] %s44_s19 }
  0x26   :  { %p529_p3 = scmp.lt.u32.totalorder %s525_s23, %s978_s2 }
  0x28   :  { %p531_p4 = pnand %p529_p3, %p526_p2 }
  0x2a   :  { %534 = shalt.err (!%p531_p4)
}
  0x2b   :  { %s535_s28 = scalar_lea.vmem %s45_s19, 2048  ;;  %p540_p6 = scmp.lt.s32.totalorder %s45_s19, %s45_s19 }
  0x2c   :  { %p536_p5 = scmp.ne.s32.totalorder %s45_s19, %s535_s28  ;;  %p541_p7 = scmp.lt.s32.totalorder %s535_s28, %s535_s28 }
  0x2e   :  { %p542_p8 = por %p541_p7, %p540_p6 }
  0x30   :  { %p543_p9 = pnand %p542_p8, %p536_p5 }
  0x32   :  { %546 = shalt.err (!%p543_p9)
}
  0x33   :  { %50 = dma.hbm_to_vmem [thread:$0]  %s978_s2, 2048, %s45_s19, [#allocation6], %s601_s30, %s601_s30, %s602_s6  }
  0x34   :  { %591 = dma.done.wait [#allocation3], 2048  }
  0x35   :  { %592 = vsyncadd [#allocation3], 4294965248 }
  0x36   :  { %593 = dma.done.wait [#allocation6], 4096  }
  0x37   :  { %594 = vsyncadd [#allocation6], 4294963200  ;;  %v96_v0 = vlaneseq  ;;  %v688_v7 = vld [vmem:[#allocation5] sm:$0xff]  ;;  %v693_v9 = vld [vmem:[#allocation5 + $0x8] sm:$0xff]  ;;  %s604_s2 = smov [#allocation8]  }
  0x38   :  { %v78_v8 = vld [vmem:[%s979_s3] sm:$0xff]  ;;  %v79_v13 = vsub.f32 1.0, %v688_v7  ;;  %v80_v15 = vsub.f32 1.0, %v693_v9  ;;  %v697_v17 = vld [vmem:[#allocation5 + $0x10] sm:$0xff]  ;;  %v699_v18 = vld [vmem:[#allocation5 + $0x18] sm:$0xff]  ;;  %s835_s3 = sshll.u32 %s604_s2, 4  ;;  %s902_s3 = int_to_ptr.vmem [resolvable:$true] %s835_s3 }
  0x39   :  { %v97_v1 = vshrl.u32 %v96_v0, 7  ;;  %v701_v19 = vld [vmem:[#allocation5 + $0x20] sm:$0xff]  ;;  %v81_v20 = vsub.f32 1.0, %v697_v17  ;;  %v82_v22 = vsub.f32 1.0, %v699_v18  ;;  %v705_v24 = vld [vmem:[#allocation5 + $0x28] sm:$0xff]  ;;  %v707_v25 = vld [vmem:[#allocation5 + $0x30] sm:$0xff]  ;;  %p552_p11 = scmp.lt.s32.totalorder %s902_s3, %s902_s3 }
  0x3a   :  { %v83_v28 = vsub.f32 1.0, %v701_v19  ;;  %v84_v32 = vsub.f32 1.0, %v705_v24  ;;  %v711_v34 = vld [vmem:[#allocation5 + $0x38] sm:$0xff]  ;;  %v85_v38 = vsub.f32 1.0, %v707_v25  ;;  %v716_v39 = vld [vmem:[#allocation5 + $0x40] sm:$0xff]  ;;  %v720_v44 = vld [vmem:[#allocation5 + $0x48] sm:$0xff] }
  0x3b   :  { %v98_v2 = vsub.s32 0, %v97_v1  ;;  %v102_v3 = vsub.s32 1, %v97_v1  ;;  %v106_v4 = vsub.s32 2, %v97_v1  ;;  %v110_v5 = vsub.s32 3, %v97_v1  ;;  %v722_v45 = vld [vmem:[#allocation5 + $0x50] sm:$0xff]  ;;  %v726_v49 = vld [vmem:[#allocation5 + $0x58] sm:$0xff] }
  0x3c   :  { %v114_v6 = vsub.s32 4, %v97_v1  ;;  %v118_v10 = vsub.s32 5, %v97_v1  ;;  %v122_v11 = vsub.s32 6, %v97_v1  ;;  %v126_v12 = vsub.s32 7, %v97_v1  ;;  %v732_v56 = vld [vmem:[#allocation5 + $0x60] sm:$0xff]  ;;  %v736_v60 = vld [vmem:[#allocation5 + $0x68] sm:$0xff] }
  0x3d   :  { %v99_v14 = vrot.slane %v78_v8, %v98_v2  ;;  %v103_v16 = vrot.slane %v78_v8, %v102_v3  ;;  %v107_v21 = vrot.slane %v78_v8, %v106_v4  ;;  %v111_v23 = vrot.slane %v78_v8, %v110_v5  ;;  %v739_v0 = vld [vmem:[#allocation5 + $0x70] sm:$0xff]  ;;  %v743_v4 = vld [vmem:[#allocation5 + $0x78] sm:$0xff]  ;;  %s547_s8 = scalar_lea.vmem %s902_s3, 2048 }
  0x3e   :  { %v115_v29 = vrot.slane %v78_v8, %v114_v6  ;;  %v119_v33 = vrot.slane %v78_v8, %v118_v10  ;;  %v123_v43 = vrot.slane %v78_v8, %v122_v11  ;;  %v86_v47 = vsub.f32 1.0, %v711_v34  ;;  %p548_p10 = scmp.ne.s32.totalorder %s902_s3, %s547_s8  ;;  %p553_p12 = scmp.lt.s32.totalorder %s547_s8, %s547_s8 }
  0x3f   :  { %v136_v26 = vmul.f32 %v99_v14, %v79_v13  ;;  %v137_v27 = vmul.f32 %v103_v16, %v80_v15  ;;  %v138_v30 = vmul.f32 %v107_v21, %v81_v20  ;;  %v139_v31 = vmul.f32 %v111_v23, %v82_v22 }
  0x40   :  { %v140_v37 = vmul.f32 %v115_v29, %v83_v28  ;;  %v141_v42 = vmul.f32 %v119_v33, %v84_v32  ;;  %v127_v48 = vrot.slane %v78_v8, %v126_v12  ;;  %v142_v51 = vmul.f32 %v123_v43, %v85_v38  ;;  %p554_p13 = por %p553_p12, %p552_p11 }
  0x41   :  { %v152_v35 = vadd.f32 %v136_v26, %v688_v7  ;;  %v153_v36 = vadd.f32 %v137_v27, %v693_v9  ;;  %v154_v40 = vadd.f32 %v138_v30, %v697_v17  ;;  %v155_v41 = vadd.f32 %v139_v31, %v699_v18 }
  0x42   :  { %v156_v46 = vadd.f32 %v140_v37, %v701_v19  ;;  %v157_v50 = vadd.f32 %v141_v42, %v705_v24  ;;  %v87_v52 = vsub.f32 1.0, %v716_v39  ;;  %v143_v53 = vmul.f32 %v127_v48, %v86_v47  ;;  %v762_v37 = vld [vmem:[#allocation2 + $0x8] sm:$0xff]  ;;  %v769_v42 = vld [vmem:[#allocation7 + $0x10] sm:$0xff]  ;;  %p555_p0 = pnand %p554_p13, %p548_p10 }
  0x43   :  { %449 = vrcp.f32 %v152_v35  ;;  %v88_v54 = vsub.f32 1.0, %v720_v44  ;;  %v89_v55 = vsub.f32 1.0, %v722_v45  ;;  %v158_v57 = vadd.f32 %v142_v51, %v707_v25  ;;  %v758_v35 = vld [vmem:[#allocation2] sm:$0xff] }
  0x44   :  { %451 = vrcp.f32 %v153_v36  ;;  %v144_v58 = vmul.f32 %v99_v14, %v87_v52  ;;  %v90_v59 = vsub.f32 1.0, %v726_v49  ;;  %v159_v61 = vadd.f32 %v143_v53, %v711_v34  ;;  %v760_v36 = vld [vmem:[#allocation7] sm:$0xff] }
  0x45   :  { %453 = vrcp.f32 %v154_v40  ;;  %v145_v62 = vmul.f32 %v103_v16, %v88_v54  ;;  %v146_v63 = vmul.f32 %v107_v21, %v89_v55  ;;  %v91_v3 = vsub.f32 1.0, %v732_v56 }
  0x46   :  { %455 = vrcp.f32 %v155_v41  ;;  %v160_v1 = vadd.f32 %v144_v58, %v716_v39  ;;  %v147_v2 = vmul.f32 %v111_v23, %v90_v59  ;;  %v92_v8 = vsub.f32 1.0, %v736_v60  ;;  %v767_v41 = vld [vmem:[#allocation2 + $0x10] sm:$0xff] }
  0x47   :  { %457 = vrcp.f32 %v156_v46  ;;  %v161_v5 = vadd.f32 %v145_v62, %v720_v44  ;;  %v162_v6 = vadd.f32 %v146_v63, %v722_v45  ;;  %v148_v11 = vmul.f32 %v115_v29, %v91_v3 }
  0x48   :  { %459 = vrcp.f32 %v157_v50  ;;  %v163_v10 = vadd.f32 %v147_v2, %v726_v49  ;;  %v93_v12 = vsub.f32 1.0, %v739_v0  ;;  %v149_v13 = vmul.f32 %v119_v33, %v92_v8  ;;  %v774_v50 = vld [vmem:[#allocation7 + $0x18] sm:$0xff] }
  0x49   :  { %461 = vrcp.f32 %v158_v57  ;;  %v94_v14 = vsub.f32 1.0, %v743_v4  ;;  %v164_v15 = vadd.f32 %v148_v11, %v732_v56  ;;  %vm312_vm0 = vcmp.ge.f32.partialorder %v758_v35, 3.0 }
  0x4a   :  { %463 = vrcp.f32 %v159_v61  ;;  %v150_v16 = vmul.f32 %v123_v43, %v93_v12  ;;  %v165_v21 = vadd.f32 %v149_v13, %v736_v60  ;;  %vm344_vm1 = vcmp.lt.f32.partialorder %v760_v36, 0.1 }
  0x4b   :  { %465 = vrcp.f32 %v160_v1  ;;  %v151_v22 = vmul.f32 %v127_v48, %v94_v14  ;;  %v772_v48 = vld [vmem:[#allocation2 + $0x18] sm:$0xff]  ;;  %vm313_vm2 = vcmp.ge.f32.partialorder %v762_v37, 3.0  ;;  %vm314_vm4 = vcmp.ge.f32.partialorder %v767_v41, 3.0  ;;  %vm821_vm8 = vmor %vm312_vm0, %vm344_vm1  ;;  %v300_v37 = vld [vmem:[#allocation2 + $0x20] sm:$0xff] }
  0x4c   :  { %467 = vrcp.f32 %v161_v5  ;;  %v166_v27 = vadd.f32 %v150_v16, %v739_v0  ;;  %vm346_vm5 = vcmp.lt.f32.partialorder %v769_v42, 0.1  ;;  %vm315_vm6 = vcmp.ge.f32.partialorder %v772_v48, 3.0  ;;  %v301_v41 = vld [vmem:[#allocation2 + $0x28] sm:$0xff] }
  0x4d   :  { %v450_v20 = vpop.eup %449  ;;  %469 = vrcp.f32 %v162_v6  ;;  %v167_v30 = vadd.f32 %v151_v22, %v743_v4  ;;  %vm347_vm7 = vcmp.lt.f32.partialorder %v774_v50, 0.1  ;;  %vm843_vm10 = vmor %vm314_vm4, %vm346_vm5  ;;  %v333_v42 = vld [vmem:[#allocation7 + $0x28] sm:$0xff]  ;;  %v334_v50 = vld [vmem:[#allocation7 + $0x30] sm:$0xff]  ;;  %vm316_vm12 = vcmp.ge.f32.partialorder %v300_v37, 3.0 }
  0x4e   :  { %v452_v23 = vpop.eup %451  ;;  %v200_v26 = vmul.f32 %v450_v20, %v688_v7  ;;  %471 = vrcp.f32 %v163_v10  ;;  %vm853_vm11 = vmor %vm315_vm6, %vm347_vm7  ;;  %vm317_vm15 = vcmp.ge.f32.partialorder %v301_v41, 3.0  ;;  %vm349_vm0 = vcmp.lt.f32.partialorder %v333_v42, 0.1 }
  0x4f   :  { %v454_v28 = vpop.eup %453  ;;  %v201_v29 = vmul.f32 %v452_v23, %v693_v9  ;;  %473 = vrcp.f32 %v164_v15  ;;  %v765_v9 = vld [vmem:[#allocation7 + $0x8] sm:$0xff] }
  0x50   :  { %v456_v31 = vpop.eup %455  ;;  %v216_v32 = vmul.f32 1.2, %v200_v26  ;;  %v202_v33 = vmul.f32 %v454_v28, %v697_v17  ;;  %475 = vrcp.f32 %v165_v21  ;;  %vm345_vm3 = vcmp.lt.f32.partialorder %v765_v9, 0.1  ;;  %v332_v9 = vld [vmem:[#allocation7 + $0x20] sm:$0xff] }
  0x51   :  { %v458_v7 = vpop.eup %457  ;;  %v217_v38 = vmul.f32 1.2, %v201_v29  ;;  %v203_v40 = vmul.f32 %v456_v31, %v699_v18  ;;  %477 = vrcp.f32 %v166_v27  ;;  %vm831_vm9 = vmor %vm313_vm2, %vm345_vm3  ;;  %vm348_vm13 = vcmp.lt.f32.partialorder %v332_v9, 0.1 }
  0x52   :  { %v460_v43 = vpop.eup %459  ;;  %v232_v17 = vadd.f32 -0.1, %v216_v32  ;;  %v218_v46 = vmul.f32 1.2, %v202_v33  ;;  %v204_v47 = vmul.f32 %v458_v7, %v701_v19  ;;  %479 = vrcp.f32 %v167_v30  ;;  %vm364_vm14 = vmor %vm316_vm12, %vm348_vm13 }
  0x53   :  { %v462_v51 = vpop.eup %461  ;;  %v233_v52 = vadd.f32 -0.1, %v217_v38  ;;  %v219_v18 = vmul.f32 1.2, %v203_v40  ;;  %v205_v53 = vmul.f32 %v460_v43, %v705_v24  ;;  %vm365_vm2 = vmor %vm317_vm15, %vm349_vm0  ;;  %vm350_vm3 = vcmp.lt.f32.partialorder %v334_v50, 0.1 }
  0x54   :  { %v464_v54 = vpop.eup %463  ;;  %v248_v55 = vmax.f32 %v232_v17, 0.0  ;;  %v234_v57 = vadd.f32 -0.1, %v218_v46  ;;  %v220_v58 = vmul.f32 1.2, %v204_v47  ;;  %v206_v19 = vmul.f32 %v462_v51, %v707_v25 }
  0x55   :  { %v466_v59 = vpop.eup %465  ;;  %v249_v61 = vmax.f32 %v233_v52, 0.0  ;;  %v235_v62 = vadd.f32 -0.1, %v219_v18  ;;  %v221_v63 = vmul.f32 1.2, %v205_v53  ;;  %v207_v24 = vmul.f32 %v464_v54, %v711_v34 }
  0x56   :  { %v468_v1 = vpop.eup %467  ;;  %v785_v2 = vmin.f32 %v248_v55, 1.0  ;;  %v250_v3 = vmax.f32 %v234_v57, 0.0  ;;  %v236_v5 = vadd.f32 -0.1, %v220_v58  ;;  %v222_v25 = vmul.f32 1.2, %v206_v19 }
  0x57   :  { %v470_v6 = vpop.eup %469  ;;  %v789_v8 = vmin.f32 %v249_v61, 1.0  ;;  %v251_v10 = vmax.f32 %v235_v62, 0.0  ;;  %v237_v11 = vadd.f32 -0.1, %v221_v63  ;;  %v223_v34 = vmul.f32 1.2, %v207_v24 }
  0x58   :  { %v472_v12 = vpop.eup %471  ;;  %280 = vst [vmem:[#allocation8] sm:$0xff] %v785_v2  ;;  %v792_v13 = vmin.f32 %v250_v3, 1.0  ;;  %v252_v14 = vmax.f32 %v236_v5, 0.0  ;;  %v238_v15 = vadd.f32 -0.1, %v222_v25  ;;  %v208_v16 = vmul.f32 %v466_v59, %v716_v39  ;;  %v302_v3 = vld [vmem:[#allocation2 + $0x30] sm:$0xff] }
  0x59   :  { %v474_v20 = vpop.eup %473  ;;  %281 = vst [vmem:[#allocation8 + $0x8] sm:$0xff] %v789_v8  ;;  %v796_v21 = vmin.f32 %v251_v10, 1.0  ;;  %v253_v22 = vmax.f32 %v237_v11, 0.0  ;;  %v239_v23 = vadd.f32 -0.1, %v223_v34  ;;  %v209_v26 = vmul.f32 %v468_v1, %v720_v44  ;;  %v303_v11 = vld [vmem:[#allocation2 + $0x38] sm:$0xff] }
  0x5a   :  { %v476_v27 = vpop.eup %475  ;;  %282 = vst [vmem:[#allocation8 + $0x10] sm:$0xff] %v792_v13  ;;  %v800_v28 = vmin.f32 %v252_v14, 1.0  ;;  %v254_v29 = vmax.f32 %v238_v15, 0.0  ;;  %v224_v30 = vmul.f32 1.2, %v208_v16  ;;  %v210_v31 = vmul.f32 %v470_v6, %v722_v45  ;;  %v335_v15 = vld [vmem:[#allocation7 + $0x38] sm:$0xff] }
  0x5b   :  { %v478_v32 = vpop.eup %477  ;;  %283 = vst [vmem:[#allocation8 + $0x18] sm:$0xff] %v796_v21  ;;  %v804_v39 = vmin.f32 %v253_v22, 1.0  ;;  %v255_v33 = vmax.f32 %v239_v23, 0.0  ;;  %v225_v7 = vmul.f32 1.2, %v209_v26  ;;  %v211_v38 = vmul.f32 %v472_v12, %v726_v49  ;;  %v304_v16 = vld [vmem:[#allocation2 + $0x40] sm:$0xff] }
  0x5c   :  { %v480_v40 = vpop.eup %479  ;;  %284 = vst [vmem:[#allocation8 + $0x20] sm:$0xff] %v800_v28  ;;  %v808_v44 = vmin.f32 %v254_v29, 1.0  ;;  %v240_v43 = vadd.f32 -0.1, %v224_v30  ;;  %v226_v17 = vmul.f32 1.2, %v210_v31  ;;  %v212_v46 = vmul.f32 %v474_v20, %v732_v56 }
  0x5d   :  { %285 = vst [vmem:[#allocation8 + $0x28] sm:$0xff] %v804_v39  ;;  %v812_v45 = vmin.f32 %v255_v33, 1.0  ;;  %v241_v47 = vadd.f32 -0.1, %v225_v7  ;;  %v227_v51 = vmul.f32 1.2, %v211_v38  ;;  %v213_v52 = vmul.f32 %v476_v27, %v736_v60 }
  0x5e   :  { %286 = vst [vmem:[#allocation8 + $0x30] sm:$0xff] %v808_v44  ;;  %v256_v49 = vmax.f32 %v240_v43, 0.0  ;;  %v242_v18 = vadd.f32 -0.1, %v226_v17  ;;  %v228_v53 = vmul.f32 1.2, %v212_v46  ;;  %v214_v54 = vmul.f32 %v478_v32, %v739_v0 }
  0x5f   :  { %287 = vst [vmem:[#allocation8 + $0x38] sm:$0xff] %v812_v45  ;;  %v257_v55 = vmax.f32 %v241_v47, 0.0  ;;  %v243_v57 = vadd.f32 -0.1, %v227_v51  ;;  %v229_v60 = vmul.f32 1.2, %v213_v52  ;;  %v215_v58 = vmul.f32 %v480_v40, %v743_v4 }
  0x60   :  { %v837_v35 = vmin.f32 %v256_v49, 1.0  ;;  %v258_v36 = vmax.f32 %v242_v18, 0.0  ;;  %v244_v19 = vadd.f32 -0.1, %v228_v53  ;;  %v230_v59 = vmul.f32 1.2, %v214_v54 }
  0x61   :  { %v847_v61 = vmin.f32 %v257_v55, 1.0  ;;  %v259_v62 = vmax.f32 %v243_v57, 0.0  ;;  %v245_v63 = vadd.f32 -0.1, %v229_v60  ;;  %v231_v24 = vmul.f32 1.2, %v215_v58 }
  0x62   :  { %288 = vst [vmem:[#allocation8 + $0x40] sm:$0xff] %v837_v35  ;;  %v858_v5 = vmin.f32 %v258_v36, 1.0  ;;  %v260_v25 = vmax.f32 %v244_v19, 0.0  ;;  %v246_v6 = vadd.f32 -0.1, %v230_v59  ;;  %v376_v10 = vsel %vm821_vm8, %v785_v2, 0.0 }
  0x63   :  { %289 = vst [vmem:[#allocation8 + $0x48] sm:$0xff] %v847_v61  ;;  %v864_v48 = vmin.f32 %v259_v62, 1.0  ;;  %v261_v34 = vmax.f32 %v245_v63, 0.0  ;;  %v247_v12 = vadd.f32 -0.1, %v231_v24  ;;  %392 = vst [vmem:[#allocation9] sm:$0xff] %v376_v10 }
  0x64   :  { %v377_v14 = vsel %vm831_vm9, %v789_v8, 0.0  ;;  %v336_v20 = vld [vmem:[#allocation7 + $0x40] sm:$0xff]  ;;  %290 = vst [vmem:[#allocation8 + $0x50] sm:$0xff] %v858_v5  ;;  %v870_v22 = vmin.f32 %v260_v25, 1.0  ;;  %v262_v2 = vmax.f32 %v246_v6, 0.0  ;;  %v378_v23 = vsel %vm843_vm10, %v792_v13, 0.0 }
  0x65   :  { %393 = vst [vmem:[#allocation9 + $0x8] sm:$0xff] %v377_v14  ;;  %v379_v26 = vsel %vm853_vm11, %v796_v21, 0.0  ;;  %v305_v27 = vld [vmem:[#allocation2 + $0x48] sm:$0xff]  ;;  %v306_v8 = vld [vmem:[#allocation2 + $0x50] sm:$0xff]  ;;  %291 = vst [vmem:[#allocation8 + $0x58] sm:$0xff] %v864_v48  ;;  %v879_v30 = vmin.f32 %v261_v34, 1.0 }
  0x66   :  { %v337_v29 = vld [vmem:[#allocation7 + $0x48] sm:$0xff]  ;;  %v263_v31 = vmax.f32 %v247_v12, 0.0  ;;  %394 = vst [vmem:[#allocation9 + $0x10] sm:$0xff] %v378_v23  ;;  %395 = vst [vmem:[#allocation9 + $0x18] sm:$0xff] %v379_v26  ;;  %v338_v32 = vld [vmem:[#allocation7 + $0x50] sm:$0xff]  ;;  %v882_v13 = vmin.f32 %v262_v2, 1.0 }
  0x67   :  { %v307_v33 = vld [vmem:[#allocation2 + $0x58] sm:$0xff]  ;;  %292 = vst [vmem:[#allocation8 + $0x60] sm:$0xff] %v870_v22  ;;  %vm318_vm1 = vcmp.ge.f32.partialorder %v302_v3, 3.0  ;;  %v884_v21 = vld [vmem:[#allocation2 + $0x60] sm:$0xff]  ;;  %293 = vst [vmem:[#allocation8 + $0x68] sm:$0xff] %v879_v30  ;;  %v380_v43 = vsel %vm364_vm14, %v800_v28, 0.0 }
  0x68   :  { %v339_v7 = vld [vmem:[#allocation7 + $0x58] sm:$0xff]  ;;  %v886_v38 = vld [vmem:[#allocation7 + $0x60] sm:$0xff]  ;;  %v889_v40 = vmin.f32 %v263_v31, 1.0  ;;  %vm319_vm4 = vcmp.ge.f32.partialorder %v303_v11, 3.0  ;;  %v892_v17 = vld [vmem:[#allocation2 + $0x68] sm:$0xff]  ;;  %294 = vst [vmem:[#allocation8 + $0x70] sm:$0xff] %v882_v13 }
  0x69   :  { %v894_v46 = vld [vmem:[#allocation7 + $0x68] sm:$0xff]  ;;  %396 = vst [vmem:[#allocation9 + $0x20] sm:$0xff] %v380_v43  ;;  %v381_v47 = vsel %vm365_vm2, %v804_v39, 0.0  ;;  %vm366_vm5 = vmor %vm318_vm1, %vm350_vm3  ;;  %vm351_vm6 = vcmp.lt.f32.partialorder %v335_v15, 0.1  ;;  %vm320_vm7 = vcmp.ge.f32.partialorder %v304_v16, 3.0 }
  0x6a   :  { %vm352_vm8 = vcmp.lt.f32.partialorder %v336_v20, 0.1  ;;  %v310_v51 = vld [vmem:[#allocation2 + $0x70] sm:$0xff]  ;;  %295 = vst [vmem:[#allocation8 + $0x78] sm:$0xff] %v889_v40  ;;  %397 = vst [vmem:[#allocation9 + $0x28] sm:$0xff] %v381_v47  ;;  %v382_v28 = vsel %vm366_vm5, %v808_v44, 0.0 }
  0x6b   :  { %vm367_vm9 = vmor %vm319_vm4, %vm351_vm6  ;;  %vm321_vm10 = vcmp.ge.f32.partialorder %v305_v27, 3.0  ;;  %vm353_vm11 = vcmp.lt.f32.partialorder %v337_v29, 0.1  ;;  %vm322_vm12 = vcmp.ge.f32.partialorder %v306_v8, 3.0  ;;  %v342_v52 = vld [vmem:[#allocation7 + $0x70] sm:$0xff]  ;;  %398 = vst [vmem:[#allocation9 + $0x30] sm:$0xff] %v382_v28 }
  0x6c   :  { %v383_v49 = vsel %vm367_vm9, %v812_v45, 0.0  ;;  %vm368_vm13 = vmor %vm320_vm7, %vm352_vm8  ;;  %vm354_vm14 = vcmp.lt.f32.partialorder %v338_v32, 0.1  ;;  %vm323_vm15 = vcmp.ge.f32.partialorder %v307_v33, 3.0  ;;  %vm355_vm0 = vcmp.lt.f32.partialorder %v339_v7, 0.1 }
  0x6d   :  { %399 = vst [vmem:[#allocation9 + $0x38] sm:$0xff] %v383_v49  ;;  %v384_v39 = vsel %vm368_vm13, %v837_v35, 0.0  ;;  %vm369_vm1 = vmor %vm321_vm10, %vm353_vm11  ;;  %vm324_vm2 = vcmp.ge.f32.partialorder %v884_v21, 3.0  ;;  %vm356_vm3 = vcmp.lt.f32.partialorder %v886_v38, 0.1  ;;  %v311_v44 = vld [vmem:[#allocation2 + $0x78] sm:$0xff] }
  0x6e   :  { %v343_v18 = vld [vmem:[#allocation7 + $0x78] sm:$0xff]  ;;  %400 = vst [vmem:[#allocation9 + $0x40] sm:$0xff] %v384_v39  ;;  %v385_v45 = vsel %vm369_vm1, %v847_v61, 0.0  ;;  %vm909_vm4 = vmor %vm322_vm12, %vm354_vm14  ;;  %vm325_vm5 = vcmp.ge.f32.partialorder %v892_v17, 3.0  ;;  %vm357_vm6 = vcmp.lt.f32.partialorder %v894_v46, 0.1 }
  0x6f   :  { %401 = vst [vmem:[#allocation9 + $0x48] sm:$0xff] %v385_v45  ;;  %v386_v54 = vsel %vm909_vm4, %v858_v5, 0.0  ;;  %vm920_vm7 = vmor %vm323_vm15, %vm355_vm0  ;;  %vm326_vm8 = vcmp.ge.f32.partialorder %v310_v51, 3.0  ;;  %vm358_vm9 = vcmp.lt.f32.partialorder %v342_v52, 0.1 }
  0x70   :  { %558 = shalt.err (!%p555_p0)
}
  0x71   :  { %s559_s11 = scalar_lea.hbm %s980_s4, 2048 }
  0x72   :  { %p560_p1 = scmp.ne.s32.totalorder %s980_s4, %s559_s11  ;;  %p563_p2 = scmp.lt.u32.totalorder %s559_s11, %s980_s4 }
  0x74   :  { %p565_p3 = pnand %p563_p2, %p560_p1 }
  0x76   :  { %568 = shalt.err (!%p565_p3)
}
  0x77   :  { %419 = dma.vmem_to_hbm [thread:$0]  %s902_s3, 2048, %s980_s4, [#allocation4], %s601_s30, %s601_s30, %s602_s6   ;;  %402 = vst [vmem:[#allocation9 + $0x50] sm:$0xff] %v386_v54  ;;  %v387_v55 = vsel %vm920_vm7, %v864_v48, 0.0  ;;  %vm372_vm10 = vmor %vm324_vm2, %vm356_vm3  ;;  %vm327_vm11 = vcmp.ge.f32.partialorder %v311_v44, 3.0 }
  0x78   :  { %vm359_vm12 = vcmp.lt.f32.partialorder %v343_v18, 0.1  ;;  %s605_s17 = smov [#allocation9]   ;;  %403 = vst [vmem:[#allocation9 + $0x58] sm:$0xff] %v387_v55  ;;  %v388_v57 = vsel %vm372_vm10, %v870_v22, 0.0  ;;  %vm373_vm13 = vmor %vm325_vm5, %vm357_vm6 }
  0x79   :  { %s425_s18 = sshll.u32 %s605_s17, 4  ;;  %404 = vst [vmem:[#allocation9 + $0x60] sm:$0xff] %v388_v57  ;;  %v389_v60 = vsel %vm373_vm13, %v879_v30, 0.0  ;;  %vm374_vm14 = vmor %vm326_vm8, %vm358_vm9  ;;  %s426_s18 = int_to_ptr.vmem [resolvable:$true] %s425_s18 }
  0x7a   :  { %405 = vst [vmem:[#allocation9 + $0x68] sm:$0xff] %v389_v60  ;;  %v390_v58 = vsel %vm374_vm14, %v882_v13, 0.0  ;;  %vm375_vm15 = vmor %vm327_vm11, %vm359_vm12  ;;  %s569_s4 = scalar_lea.vmem %s426_s18, 2048  ;;  %p574_p5 = scmp.lt.s32.totalorder %s426_s18, %s426_s18 }
  0x7b   :  { %406 = vst [vmem:[#allocation9 + $0x70] sm:$0xff] %v390_v58  ;;  %v391_v0 = vsel %vm375_vm15, %v889_v40, 0.0  ;;  %p570_p4 = scmp.ne.s32.totalorder %s426_s18, %s569_s4  ;;  %p575_p6 = scmp.lt.s32.totalorder %s569_s4, %s569_s4 }
  0x7c   :  { %407 = vst [vmem:[#allocation9 + $0x78] sm:$0xff] %v391_v0 }
  0x7d   :  { %p576_p7 = por %p575_p6, %p574_p5 }
  0x7f   :  { %p577_p8 = pnand %p576_p7, %p570_p4 }
  0x81   :  { %580 = shalt.err (!%p577_p8)
}
  0x82   :  { %s581_s22 = scalar_lea.hbm %s981_s5, 2048 }
  0x83   :  { %p582_p9 = scmp.ne.s32.totalorder %s981_s5, %s581_s22  ;;  %p585_p10 = scmp.lt.u32.totalorder %s581_s22, %s981_s5 }
  0x85   :  { %p587_p11 = pnand %p585_p10, %p582_p9 }
  0x87   :  { %590 = shalt.err (!%p587_p11)
}
  0x88   :  { %431 = dma.vmem_to_hbm [thread:$0]  %s426_s18, 2048, %s981_s5, [#allocation10], %s601_s30, %s601_s30, %s602_s6  }
  0x89   :  { %595 = dma.done.wait [#allocation4], 2048  }
  0x8a   :  { %596 = vsyncadd [#allocation4], 4294965248 }
  0x8b   :  { %597 = dma.done.wait [#allocation10], 2048  }
  0x8c   :  { %598 = vsyncadd [#allocation10], 4294965248 }
  0x8d   :  { %438 = vsyncpa [#allocation3], 1 }
  0x8e   :  { %439 = vsyncpa [#allocation6], 1 }
  0x8f   :  { %440 = vsyncpa [#allocation4], 1 }
  0x90   :  { %441 = vsyncpa [#allocation10], 1 }

</bundles_post_ra>
